<compile_context>
chip_gen: v6e
topology: v6e:2x2x1
jax: 0.10.0
libtpu: 0.0.40
codegen_flags: <defaults>
</compile_context>

<pallas_src>
import functools

import jax
import jax.numpy as jnp
from jax import lax
from jax.experimental import pallas as pl
from jax.experimental.pallas import tpu as pltpu


def _round_up(v, m):
    return ((v + m - 1) // m) * m


def _vmem_capacity_bytes():
    try:
        return int(pltpu.get_tpu_info().vmem_capacity_bytes)
    except Exception:
        return 64 * 1024 * 1024  # conservative fallback (v7x per-TC physical VMEM)


# ---------------------------------------------------------------------------
# Kernels
# ---------------------------------------------------------------------------
def _fh_kernel_resident(x_ref, w_ref, b_ref, o_ref, *, transpose_rhs):
    """Path A: 1-D grid over M; full-K contraction, W resident in VMEM, bias fused."""
    if transpose_rhs:  # W in PyTorch layout [tw, nf]: contract last dims (A @ B^T)
        acc = lax.dot_general(
            x_ref[...], w_ref[...],
            dimension_numbers=(((1,), (1,)), ((), ())),
            preferred_element_type=jnp.float32)
    else:              # W pre-transposed [nf, tw]
        acc = jnp.dot(x_ref[...], w_ref[...], preferred_element_type=jnp.float32)
    o_ref[...] = (acc + b_ref[...].astype(jnp.float32)).astype(o_ref.dtype)


def _fh_kernel_tiled(x_ref, w_ref, b_ref, o_ref, acc_ref, *, transpose_rhs):
    """Path B: 3-D grid (M, N, K) with K last ('arbitrary'); f32 accumulator."""
    k = pl.program_id(2)

    @pl.when(k == 0)
    def _():
        # Fold the bias into the accumulator init (removes an epilogue add).
        acc_ref[...] = jnp.broadcast_to(
            b_ref[...].astype(jnp.float32), acc_ref.shape)

    if transpose_rhs:
        acc_ref[...] += lax.dot_general(
            x_ref[...], w_ref[...],
            dimension_numbers=(((1,), (1,)), ((), ())),
            preferred_element_type=jnp.float32)
    else:
        acc_ref[...] += jnp.dot(x_ref[...], w_ref[...],
                                preferred_element_type=jnp.float32)

    @pl.when(k == pl.num_programs(2) - 1)
    def _():
        o_ref[...] = acc_ref[...].astype(o_ref.dtype)


# ---------------------------------------------------------------------------
# Wrapper
# ---------------------------------------------------------------------------
def flatten_head_forward(x, weight, bias, *, weight_layout="out_in",
                         compute_dtype=None, force_tiled=False):
    """x: [B, n_vars, d_model, num_patches].
    weight: [target_window, nf] (PyTorch, weight_layout="out_in") or
            [nf, target_window] (weight_layout="in_out", no transpose anywhere).
    bias: [target_window]."""
    B, n_vars, d_model, num_patches = x.shape
    nf = d_model * num_patches
    M = B * n_vars

    if weight_layout == "out_in":
        target_window = weight.shape[0]
        assert weight.shape == (target_window, nf)
        transpose_rhs = True
    elif weight_layout == "in_out":
        target_window = weight.shape[1]
        assert weight.shape == (nf, target_window)
        transpose_rhs = False
    else:
        raise ValueError(f"unknown weight_layout: {weight_layout!r}")

    out_dtype = x.dtype

    # Flatten is a free (contiguous) reshape — no copy, no padding.
    x_flat = x.reshape(M, nf)
    w = weight
    b = bias.reshape(1, target_window)

    if compute_dtype is not None and jnp.dtype(compute_dtype) != x_flat.dtype:
        # Explicit opt-in precision change; ideally the producer already emits
        # this dtype so the cast does not add an extra pass over X.
        x_flat = x_flat.astype(compute_dtype)
    if w.dtype != x_flat.dtype:
        w = w.astype(x_flat.dtype)
    cdt = x_flat.dtype

    isz = jnp.dtype(cdt).itemsize
    osz = jnp.dtype(out_dtype).itemsize
    sub = 16 if isz == 2 else 8  # sublane packing granularity

    # --- M tiling: >= 4 tiles when possible (2-TC sharding + DMA/compute overlap) ---
    if M < sub:
        tm = M                                   # full dim -> no (8,128) constraint
    else:
        tm = min(256, _round_up(pl.cdiv(M, 4), sub))   # always <= M for M >= sub
    num_m = pl.cdiv(M, tm)

    # --- generation-aware VMEM budget ---
    cap = _vmem_capacity_bytes()
    budget = int(0.70 * cap)

    nf_l = _round_up(nf, 128)
    tw_l = _round_up(target_window, 128)
    w_rows = target_window if transpose_rhs else nf
    w_cols = nf if transpose_rhs else target_window
    # Inputs are double-buffered by default -> count 2x W (review correctness item).
    w_vmem = _round_up(w_rows, sub) * _round_up(w_cols, 128) * isz
    est = (2 * w_vmem
           + 2 * tm * nf_l * isz
           + 2 * tm * tw_l * osz
           + 2 * 8 * tw_l * 4
           + (2 << 20))                          # Mosaic internal scratch margin

    cost = pl.CostEstimate(
        flops=2 * M * nf * target_window,
        bytes_accessed=(M * nf * isz + w_rows * w_cols * isz
                        + M * target_window * osz + target_window * 4),
        transcendentals=0)

    if (not force_tiled) and est <= budget:
        # ---------------- Path A: resident W, grid over M only ----------------
        vmem_limit = int(min(max(est + (4 << 20), 32 << 20), int(0.9 * cap)))
        kern = functools.partial(_fh_kernel_resident, transpose_rhs=transpose_rhs)
        y = pl.pallas_call(
            kern,
            out_shape=jax.ShapeDtypeStruct((M, target_window), out_dtype),
            grid_spec=pltpu.PrefetchScalarGridSpec(
                num_scalar_prefetch=0,
                grid=(num_m,),
                in_specs=[
                    # X tile: last dim == full nf (bypasses 128-divisibility);
                    # ragged last M block handled by masked stores.
                    pl.BlockSpec((tm, nf), lambda i: (i, 0)),
                    # Full W, constant index map -> DMA'd from HBM exactly once.
                    pl.BlockSpec((w_rows, w_cols), lambda i: (0, 0)),
                    pl.BlockSpec((1, target_window), lambda i: (0, 0)),
                ],
                out_specs=pl.BlockSpec((tm, target_window), lambda i: (i, 0)),
            ),
            compiler_params=pltpu.CompilerParams(
                dimension_semantics=("parallel",),
                vmem_limit_bytes=vmem_limit),
            cost_estimate=cost,
        )(x_flat, w, b)
    else:
        # ------------- Path B (rare): W too large for VMEM residency -------------
        # Classic (M, N, K)-tiled GEMM with f32 accumulator.  K tiling requires an
        # exact tile multiple, so only here do we zero-pad the contraction dim
        # (<= 127 columns); in this regime W dominates HBM traffic, so the small
        # X/W pad copy is negligible.
        tn = target_window if target_window <= 512 else 512
        nf_pad = _round_up(nf, 128)
        tk = 128
        for cand in range(1024, 127, -128):
            if nf_pad % cand == 0:
                tk = cand
                break

        def pad_last(a, cols):
            return a if a.shape[-1] == cols else jnp.pad(
                a, ((0, 0), (0, cols - a.shape[-1])))

        xp = pad_last(x_flat, nf_pad)
        if transpose_rhs:
            wp = pad_last(w, nf_pad)                              # [tw, nf_pad]
            w_spec = pl.BlockSpec((tn, tk), lambda i, j, k: (j, k))
        else:
            wp = w if nf_pad == nf else jnp.pad(w, ((0, nf_pad - nf), (0, 0)))
            w_spec = pl.BlockSpec((tk, tn), lambda i, j, k: (k, j))

        num_n = pl.cdiv(target_window, tn)
        num_k = nf_pad // tk
        tn_l = _round_up(tn, 128)
        est_b = (2 * tm * tk * isz
                 + 2 * _round_up(tn, sub) * tk * isz
                 + 2 * tm * tn_l * osz
                 + tm * tn_l * 4
                 + 2 * 8 * tn_l * 4
                 + (2 << 20))
        vmem_limit = int(min(max(est_b + (4 << 20), 32 << 20), int(0.9 * cap)))
        kern = functools.partial(_fh_kernel_tiled, transpose_rhs=transpose_rhs)
        y = pl.pallas_call(
            kern,
            out_shape=jax.ShapeDtypeStruct((M, target_window), out_dtype),
            grid_spec=pltpu.PrefetchScalarGridSpec(
                num_scalar_prefetch=0,
                grid=(num_m, num_n, num_k),
                in_specs=[
                    pl.BlockSpec((tm, tk), lambda i, j, k: (i, k)),   # X tile
                    w_spec,                                           # W tile
                    pl.BlockSpec((1, tn), lambda i, j, k: (0, j)),    # bias tile
                ],
                out_specs=pl.BlockSpec((tm, tn), lambda i, j, k: (i, j)),
                scratch_shapes=[pltpu.VMEM((tm, tn), jnp.float32)],
            ),
            compiler_params=pltpu.CompilerParams(
                dimension_semantics=("parallel", "parallel", "arbitrary"),
                vmem_limit_bytes=vmem_limit),
            cost_estimate=cost,
        )(xp, wp, b)

    # Dropout(p=0) / eval-mode dropout == identity.
    return y.reshape(B, n_vars, target_window)


# ---------------------------------------------------------------------------
# Self-test
# ---------------------------------------------------------------------------
if __name__ == "__main__":
    key = jax.random.PRNGKey(0)

    def ref_forward(x, weight, bias):
        Bb, nv, dm, npch = x.shape
        return x.reshape(Bb, nv, dm * npch) @ weight.T + bias

    # --- case 1: small aligned shapes (resident-W path) ---
    B, n_vars, d_model, num_patches, tw = 2, 4, 16, 8, 32
    nf = d_model * num_patches                       # 128
    kx, kw, kb, key = jax.random.split(key, 4)
    x = jax.random.normal(kx, (B, n_vars, d_model, num_patches), jnp.float32)
    bound = 1.0 / (nf ** 0.5)
    w = jax.random.uniform(kw, (tw, nf), jnp.float32, -bound, bound)
    b = jax.random.uniform(kb, (tw,), jnp.float32, -bound, bound)

    y = jax.block_until_ready(flatten_head_forward(x, w, b))
    assert y.shape == (B, n_vars, tw)
    assert jnp.allclose(y, ref_forward(x, w, b), atol=1e-5, rtol=1e-5)

    # --- case 1b: pre-transposed weight layout (no transpose anywhere) ---
    y1b = jax.block_until_ready(
        flatten_head_forward(x, w.T, b, weight_layout="in_out"))
    assert jnp.allclose(y1b, ref_forward(x, w, b), atol=1e-5, rtol=1e-5)

    # --- case 2: awkward (non-multiple) shapes, no padding anywhere ---
    B2, nv2, dm2, np2, tw2 = 3, 2, 10, 7, 96
    nf2 = dm2 * np2                                  # 70
    kx2, kw2, kb2, key = jax.random.split(key, 4)
    x2 = jax.random.normal(kx2, (B2, nv2, dm2, np2), jnp.float32)
    bound2 = 1.0 / (nf2 ** 0.5)
    w2 = jax.random.uniform(kw2, (tw2, nf2), jnp.float32, -bound2, bound2)
    b2 = jax.random.uniform(kb2, (tw2,), jnp.float32, -bound2, bound2)

    y2 = jax.block_until_ready(flatten_head_forward(x2, w2, b2))
    assert y2.shape == (B2, nv2, tw2)
    assert jnp.allclose(y2, ref_forward(x2, w2, b2), atol=1e-5, rtol=1e-5)

    # --- case 3: force the tiled fallback path on the awkward shapes ---
    y3 = jax.block_until_ready(flatten_head_forward(x2, w2, b2, force_tiled=True))
    assert jnp.allclose(y3, ref_forward(x2, w2, b2), atol=1e-5, rtol=1e-5)

    print("KERNEL_OK")
</pallas_src>

<mosaic_0001>
module attributes {stable_mosaic.version = 11 : i64} {
  func.func @_fh_kernel_resident(%arg0: i32, %arg1: memref<8x128xf32, #tpu.memory_space<vmem>>, %arg2: memref<32x128xf32, #tpu.memory_space<vmem>>, %arg3: memref<1x32xf32, #tpu.memory_space<vmem>>, %arg4: memref<8x32xf32, #tpu.memory_space<vmem>>) attributes {dimension_semantics = [#tpu.dimension_semantics<parallel>], iteration_bounds = array<i64: 1>, scalar_prefetch = 0 : i64, scratch_operands = 0 : i64, tpu.core_type = #tpu.core_type<tc>, window_params = [{transform_indices = @transform_0, window_bounds = array<i64: 8, 128>}, {pipeline_mode = #tpu.pipeline_mode<synchronous>, transform_indices = @transform_1, window_bounds = array<i64: 32, 128>}, {pipeline_mode = #tpu.pipeline_mode<synchronous>, transform_indices = @transform_2, window_bounds = array<i64: 1, 32>}, {transform_indices = @transform_3, window_bounds = array<i64: 8, 32>}]} {
    %c0 = arith.constant 0 : index
    %c0_0 = arith.constant 0 : index
    %0 = vector.load %arg1[%c0, %c0_0] : memref<8x128xf32, #tpu.memory_space<vmem>>, vector<8x128xf32>
    %c0_1 = arith.constant 0 : index
    %c0_2 = arith.constant 0 : index
    %1 = vector.load %arg2[%c0_1, %c0_2] : memref<32x128xf32, #tpu.memory_space<vmem>>, vector<32x128xf32>
    %cst = arith.constant dense<0.000000e+00> : vector<8x32xf32>
    %2 = tpu.matmul %0, %1, %cst {dimension_numbers = #tpu.dot_dimension_numbers<[1], [1], [0], [0], [0, 0, 1, 0], [], []>} : vector<8x128xf32>, vector<32x128xf32>, vector<8x32xf32> -> vector<8x32xf32>
    %c0_3 = arith.constant 0 : index
    %c0_4 = arith.constant 0 : index
    %3 = vector.load %arg3[%c0_3, %c0_4] : memref<1x32xf32, #tpu.memory_space<vmem>>, vector<1x32xf32>
    %4 = vector.broadcast %3 : vector<1x32xf32> to vector<8x32xf32>
    %5 = arith.addf %2, %4 : vector<8x32xf32>
    %c0_5 = arith.constant 0 : index
    %c0_6 = arith.constant 0 : index
    %6 = vector.load %arg4[%c0_5, %c0_6] : memref<8x32xf32, #tpu.memory_space<vmem>>, vector<8x32xf32>
    tpu.vector_store %arg4[%c0_5, %c0_6], %5 {strides = array<i32>} : memref<8x32xf32, #tpu.memory_space<vmem>>, vector<8x32xf32>,
    return
  }
  func.func @transform_0(%arg0: i32) -> (i32, i32) {
    %c0_i32 = arith.constant 0 : i32
    %c0_i32_0 = arith.constant 0 : i32
    return %arg0, %c0_i32 : i32, i32
  }
  func.func @transform_1(%arg0: i32) -> (i32, i32) {
    %c0_i32 = arith.constant 0 : i32
    %c0_i32_0 = arith.constant 0 : i32
    %c0_i32_1 = arith.constant 0 : i32
    return %c0_i32, %c0_i32_0 : i32, i32
  }
  func.func @transform_2(%arg0: i32) -> (i32, i32) {
    %c0_i32 = arith.constant 0 : i32
    %c0_i32_0 = arith.constant 0 : i32
    %c0_i32_1 = arith.constant 0 : i32
    return %c0_i32, %c0_i32_0 : i32, i32
  }
  func.func @transform_3(%arg0: i32) -> (i32, i32) {
    %c0_i32 = arith.constant 0 : i32
    %c0_i32_0 = arith.constant 0 : i32
    return %arg0, %c0_i32 : i32, i32
  }
}

</mosaic_0001>

<bundles_post_ra>
// kernel: tpu_custom_call.1
= control target key start
LH: loop header
LB: loop body
LE: loop exit
PB: predicated region body
PF: predicated region fallthrough
CT: control target
= control target key end

     0   :  { %8 = vsyncpa [#allocation3], 0  ;;  %s270_s0 = inlined_call_operand.hbm [shape: f32[8,128], index: 0, kind: input, shape index: {}]   ;;  %s271_s1 = inlined_call_operand.hbm [shape: f32[32,128], index: 1, kind: input, shape index: {}]   ;;  %s272_s2 = inlined_call_operand.vmem [shape: f32[1,32], index: 2, kind: input, shape index: {}]   ;;  %s273_s3 = inlined_call_operand.hbm [shape: f32[8,32], index: 3, kind: output, shape index: {}]  }
   0x1   :  { %9 = vsyncpa [#allocation6], 0 }
   0x2   :  { %10 = vsyncpa [#allocation4], 0  ;;  %s231_s12 = smov [#allocation2]   ;;  %s232_s14 = smov [#allocation5]  }
   0x3   :  { %s17_s13 = sshll.u32 %s231_s12, 4  ;;  %s26_s15 = sshll.u32 %s232_s14, 4  ;;  %s18_s13 = int_to_ptr.vmem [resolvable:$true] %s17_s13  ;;  %s27_s15 = int_to_ptr.vmem [resolvable:$true] %s26_s15 }
   0x4   :  { %s173_s16 = scalar_lea.vmem %s18_s13, 128  ;;  %p178_p1 = scmp.lt.s32.totalorder %s18_s13, %s18_s13 }
   0x5   :  { %p174_p0 = scmp.ne.s32.totalorder %s18_s13, %s173_s16  ;;  %p179_p2 = scmp.lt.s32.totalorder %s173_s16, %s173_s16 }
   0x7   :  { %p180_p3 = por %p179_p2, %p178_p1 }
   0x9   :  { %p181_p4 = pnand %p180_p3, %p174_p0 }
   0xb   :  { %184 = shalt.err (!%p181_p4)
}
   0xc   :  { %20 = dma.hbm_to_vmem [thread:$0]  %s270_s0, 128, %s18_s13, [#allocation3]  }
   0xd   :  { %s193_s19 = scalar_lea.vmem %s27_s15, 512  ;;  %p198_p6 = scmp.lt.s32.totalorder %s27_s15, %s27_s15 }
   0xe   :  { %p194_p5 = scmp.ne.s32.totalorder %s27_s15, %s193_s19  ;;  %p199_p7 = scmp.lt.s32.totalorder %s193_s19, %s193_s19 }
  0x10   :  { %p200_p8 = por %p199_p7, %p198_p6 }
  0x12   :  { %p201_p9 = pnand %p200_p8, %p194_p5 }
  0x14   :  { %204 = shalt.err (!%p201_p9)
}
  0x15   :  { %s233_s20 = smov 128   ;;  %s234_s21 = smov 8  }
  0x16   :  { %32 = dma.hbm_to_vmem [thread:$0]  %s271_s1, 512, %s27_s15, [#allocation6], %s233_s20, %s233_s20, %s234_s21  }
  0x17   :  { %225 = dma.done.wait [#allocation3], 128  }
  0x18   :  { %226 = vsyncadd [#allocation3], 4294967168 }
  0x19   :  { %227 = dma.done.wait [#allocation6], 512  }
  0x1a   :  { %228 = vsyncadd [#allocation6], 4294966784  ;;  %v235_v0 = vmov 0.0   ;;  %vm236_vm0 = vmmov 0   ;;  %v45_v1 = vld [vmem:[#allocation5 + $0x18] sm:$0xff]  ;;  %v44_v2 = vld [vmem:[#allocation5 + $0x10] sm:$0xff] }
  0x1b   :  { %147 = vmatprep.subr.mxu0 %v235_v0  ;;  %155 = vmatprep.mubr.msk.f32.mxu0 %vm236_vm0, %v235_v0  ;;  %v43_v3 = vld [vmem:[#allocation5 + $0x8] sm:$0xff]  ;;  %v42_v4 = vld [vmem:[#allocation5] sm:$0xff]  ;;  %v41_v5 = vld [vmem:[#allocation2] sm:$0xff]  ;;  %s237_s24 = smov [#allocation7]   ;;  %vm123_vm1 = vcmask 261120  }
  0x1c   :  { %148 = vmatpush3.xpose.msra.mxu0 %v45_v1  ;;  %v141_v6 = vld [vmem:[%s272_s2] ss:$0 sm:$0xff]  ;;  %s131_s25 = sshll.u32 %s237_s24, 4  ;;  %s132_s25 = int_to_ptr.vmem [resolvable:$true] %s131_s25 }
  0x1d   :  { %149 = vmatprep.subr.mxu0 %v235_v0  ;;  %s205_s26 = scalar_lea.vmem %s132_s25, 128  ;;  %p210_p11 = scmp.lt.s32.totalorder %s132_s25, %s132_s25 }
  0x1e   :  { %p206_p10 = scmp.ne.s32.totalorder %s132_s25, %s205_s26  ;;  %p211_p12 = scmp.lt.s32.totalorder %s205_s26, %s205_s26 }
  0x20   :  { %150 = vmatpush3.xpose.msra.mxu0 %v44_v2  ;;  %p212_p13 = por %p211_p12, %p210_p11 }
  0x21   :  { %151 = vmatprep.subr.mxu0 %v235_v0 }
  0x22   :  { %p213_p0 = pnand %p212_p13, %p206_p10 }
  0x24   :  { %152 = vmatpush3.xpose.msra.mxu0 %v43_v3 }
  0x25   :  { %153 = vmatprep.subr.mxu0 %v235_v0 }
  0x28   :  { %154 = vmatpush3.xpose.msra.mxu0 %v42_v4 }
  0x2b   :  { %156 = vmatmul.mubr.f32.vlgmr.msra.gmra.mxu0 %v41_v5 }
  0xeb   :  { %v119_v7 = vpop.f32.mrf.mxu0 }
  0xec   :  { %v120_v8 = vadd.f32 %v141_v6, %v119_v7 }
  0xed   :  { %v157_v9 = vpop.f32.mrf.mxu0 }
  0xee   :  { %124 = vst.msk [vmem:[#allocation7] sm:$0xff] %vm123_vm1, %v120_v8 }
  0xef   :  { %216 = shalt.err (!%p213_p0)
}
  0xf0   :  { %134 = dma.vmem_to_hbm [thread:$0]  %s132_s25, 128, %s273_s3, [#allocation4]  }
  0xf1   :  { %229 = dma.done.wait [#allocation4], 128  }
  0xf2   :  { %230 = vsyncadd [#allocation4], 4294967168 }
  0xf3   :  { %138 = vsyncpa [#allocation3], 1 }
  0xf4   :  { %139 = vsyncpa [#allocation6], 1 }
  0xf5   :  { %140 = vsyncpa [#allocation4], 1 }

</bundles_post_ra>
